<compile_context>
chip_gen: v5e
topology: v5e:2x2
jax: 0.10.0
libtpu: 0.0.40
codegen_flags: <defaults>
</compile_context>

<pallas_src>
import functools

import jax
import jax.numpy as jnp
from jax.experimental import pallas as pl
from jax.experimental.pallas import tpu as pltpu


def _round_up(n, m):
    return ((n + m - 1) // m) * m


def _heads_epilogue(y, pi_ref, sig_ref, mu_ref, *, gpad, gopad):
    """Apply per-head activations to lane-aligned slices of y and store."""
    # pi head: softmax over the first `gpad` lanes.  Padded lanes carry a
    # -1e30 bias so exp() underflows to 0 and they drop out of the sum.
    pi_logits = y[:, :gpad]
    m = jnp.max(pi_logits, axis=-1, keepdims=True)
    e = jnp.exp(pi_logits - m)
    denom = jnp.sum(e, axis=-1, keepdims=True)
    pi_ref[...] = (e / denom).astype(pi_ref.dtype)          # exact divide

    # sigma head: exp only on its own segment (no full-slab exp).
    sig_ref[...] = jnp.exp(y[:, gpad:gpad + gopad]).astype(sig_ref.dtype)

    # mu head: identity.
    mu_ref[...] = y[:, gpad + gopad:].astype(mu_ref.dtype)


def mdn_kernel_resident(x_ref, w_ref, b_ref, pi_ref, sig_ref, mu_ref, *, gpad, gopad):
    """Single fused matmul with the whole (F, Npad) weight slab VMEM-resident."""
    y = jnp.dot(x_ref[...], w_ref[...], preferred_element_type=jnp.float32)
    y = y + b_ref[...]
    _heads_epilogue(y, pi_ref, sig_ref, mu_ref, gpad=gpad, gopad=gopad)


def mdn_kernel_ktiled(x_ref, w_ref, b_ref, pi_ref, sig_ref, mu_ref, acc_ref, *,
                      gpad, gopad):
    """K-tiled variant: accumulate partial matmuls, epilogue at the last K step."""
    k = pl.program_id(1)

    @pl.when(k == 0)
    def _():
        acc_ref[...] = jnp.zeros_like(acc_ref)

    acc_ref[...] += jnp.dot(x_ref[...], w_ref[...],
                            preferred_element_type=jnp.float32)

    @pl.when(k == pl.num_programs(1) - 1)
    def _():
        y = acc_ref[...] + b_ref[...]
        _heads_epilogue(y, pi_ref, sig_ref, mu_ref, gpad=gpad, gopad=gopad)


def mdn_forward(x, params, *, compute_dtype=jnp.float32, max_k_tile=2048):
    """x: (B, S, F). Returns (pi, sigma, mu) matching the PyTorch module."""
    B, S, F = x.shape
    wpi, bpi, wsig, bsig, wmu, bmu = params
    G = wpi.shape[1]
    GO = wsig.shape[1]
    O = GO // G
    T = B * S

    gpad = _round_up(G, 128)
    gopad = _round_up(GO, 128)
    npad = gpad + 2 * gopad

    # ---- pack the three heads head-aligned into one zero-padded slab -------
    wpi_p = jnp.pad(wpi, ((0, 0), (0, gpad - G)))
    bpi_p = jnp.pad(bpi, ((0, 0), (0, gpad - G)), constant_values=-1e30)
    wsig_p = jnp.pad(wsig, ((0, 0), (0, gopad - GO)))
    bsig_p = jnp.pad(bsig, ((0, 0), (0, gopad - GO)))
    wmu_p = jnp.pad(wmu, ((0, 0), (0, gopad - GO)))
    bmu_p = jnp.pad(bmu, ((0, 0), (0, gopad - GO)))

    w_cat = jnp.concatenate([wpi_p, wsig_p, wmu_p], axis=1).astype(compute_dtype)
    b_cat = jnp.concatenate([bpi_p, bsig_p, bmu_p], axis=1).astype(jnp.float32)
    x2d = x.reshape(T, F).astype(compute_dtype)

    # ---- K (in_features) tiling --------------------------------------------
    if F <= max_k_tile:
        tk, fp, nk = F, F, 1
    else:
        assert max_k_tile % 128 == 0, "K tile must be a multiple of 128 lanes"
        tk = max_k_tile
        fp = _round_up(F, tk)
        nk = fp // tk
        if fp != F:
            x2d = jnp.pad(x2d, ((0, 0), (0, fp - F)))
            w_cat = jnp.pad(w_cat, ((0, fp - F), (0, 0)))

    # ---- token (M) tiling ---------------------------------------------------
    itemsize = jnp.dtype(compute_dtype).itemsize

    def _tile_vmem_bytes(tm):
        x_bytes = 2 * tm * tk * itemsize             # double-buffered x tile
        w_bytes = 2 * tk * npad * itemsize           # weight tile (double-buffered)
        b_bytes = 2 * npad * 4
        out_bytes = 2 * tm * (gpad + 2 * gopad) * 4  # three double-buffered outputs
        acc_bytes = tm * npad * 4 if nk > 1 else 0
        return x_bytes + w_bytes + b_bytes + out_bytes + acc_bytes

    # v7x-safe budget (64 MiB physical VMEM); v5e/v6e have 128 MiB headroom.
    # TODO(synk): query pltpu.get_tpu_info() at trace time and raise the budget
    # (and TM up to 2048) on v5e/v6e where VMEM is 128 MiB.
    vmem_budget = 36 * 1024 * 1024

    tm = min(1024, _round_up(T, 8))
    if T > 8 and pl.cdiv(T, tm) < 2:
        # >=2 token tiles so the "parallel" axis can occupy both v7x TensorCores.
        tm = _round_up(pl.cdiv(T, 2), 8)
    while tm > 8 and _tile_vmem_bytes(tm) > vmem_budget:
        tm = _round_up(tm // 2, 8)
    nt = pl.cdiv(T, tm)

    # ---- specs / grid --------------------------------------------------------
    out_shape = (
        jax.ShapeDtypeStruct((T, gpad), jnp.float32),
        jax.ShapeDtypeStruct((T, gopad), jnp.float32),
        jax.ShapeDtypeStruct((T, gopad), jnp.float32),
    )

    if nk == 1:
        grid = (nt,)
        in_specs = [
            pl.BlockSpec((tm, fp), lambda i: (i, 0)),     # x tile
            # TODO(synk): single-buffer the resident W/b blocks
            # (pipeline_mode=pl.Buffered(1)) to halve resident-weight VMEM on v7x.
            pl.BlockSpec((fp, npad), lambda i: (0, 0)),   # fused W (resident)
            pl.BlockSpec((1, npad), lambda i: (0, 0)),    # fused bias (resident)
        ]
        out_specs = [
            pl.BlockSpec((tm, gpad), lambda i: (i, 0)),
            pl.BlockSpec((tm, gopad), lambda i: (i, 0)),
            pl.BlockSpec((tm, gopad), lambda i: (i, 0)),
        ]
        scratch = []
        dims = ("parallel",)
        kernel = functools.partial(mdn_kernel_resident, gpad=gpad, gopad=gopad)
    else:
        grid = (nt, nk)                                   # K reduction axis last
        in_specs = [
            pl.BlockSpec((tm, tk), lambda i, k: (i, k)),
            pl.BlockSpec((tk, npad), lambda i, k: (k, 0)),
            pl.BlockSpec((1, npad), lambda i, k: (0, 0)),
        ]
        out_specs = [
            pl.BlockSpec((tm, gpad), lambda i, k: (i, 0)),
            pl.BlockSpec((tm, gopad), lambda i, k: (i, 0)),
            pl.BlockSpec((tm, gopad), lambda i, k: (i, 0)),
        ]
        scratch = [pltpu.VMEM((tm, npad), jnp.float32)]
        dims = ("parallel", "arbitrary")
        kernel = functools.partial(mdn_kernel_ktiled, gpad=gpad, gopad=gopad)

    cost = pl.CostEstimate(
        flops=2 * T * fp * npad,
        transcendentals=T * (gpad + gopad),
        bytes_accessed=itemsize * (T * fp + fp * npad)
        + 4 * (npad + T * (gpad + 2 * gopad)),
    )

    pi_p, sig_p, mu_p = pl.pallas_call(
        kernel,
        grid=grid,
        in_specs=in_specs,
        out_specs=out_specs,
        out_shape=out_shape,
        scratch_shapes=scratch,
        compiler_params=pltpu.CompilerParams(
            dimension_semantics=dims,
            vmem_limit_bytes=48 * 1024 * 1024,
        ),
        cost_estimate=cost,
    )(x2d, w_cat, b_cat)

    pi = pi_p[:, :G].reshape(B, S, G)
    sigma = sig_p[:, :GO].reshape(B, S, G, O)   # view(B,S,G,O): col = g*O + o
    mu = mu_p[:, :GO].reshape(B, S, G, O)
    return pi, sigma, mu
    # TODO(synk): for very wide heads (Npad >> 512), add an output-column grid
    # axis (TN tiles) so only the tile owning the pi segment runs the softmax.


def init_params(key, in_features, out_features, num_gaussians):
    """Deterministic PyTorch-Linear-style init (uniform(-1/sqrt(fan_in), +...))."""
    G, O, F = num_gaussians, out_features, in_features
    bound = 1.0 / (F ** 0.5)
    keys = jax.random.split(key, 6)
    u = lambda k, shape: jax.random.uniform(k, shape, jnp.float32, -bound, bound)
    wpi = u(keys[0], (F, G))
    bpi = u(keys[1], (1, G))
    wsig = u(keys[2], (F, G * O))
    bsig = u(keys[3], (1, G * O))
    wmu = u(keys[4], (F, G * O))
    bmu = u(keys[5], (1, G * O))
    return (wpi, bpi, wsig, bsig, wmu, bmu)


def mdn_reference(x, params):
    """Plain-JAX reference for the correctness check."""
    wpi, bpi, wsig, bsig, wmu, bmu = params
    B, S, F = x.shape
    G = wpi.shape[1]
    O = wsig.shape[1] // G
    with jax.default_matmul_precision("float32"):
        pi = jax.nn.softmax(x @ wpi + bpi[0], axis=-1)
        sigma = jnp.exp(x @ wsig + bsig[0]).reshape(B, S, G, O)
        mu = (x @ wmu + bmu[0]).reshape(B, S, G, O)
    return pi, sigma, mu


def _assert_close(name, got, want, atol=1e-2, rtol=1e-2):
    # Tolerance accommodates f32-vs-MXU-multipass matmul precision differences
    # between the kernel and the XLA reference; structural bugs give O(0.1+) errors.
    if not jnp.allclose(got, want, atol=atol, rtol=rtol):
        err = float(jnp.max(jnp.abs(got - want)))
        raise AssertionError(f"{name} mismatch, max abs err = {err}")


if __name__ == "__main__":
    B, S = 2, 8
    out_features, num_gaussians = 4, 5
    key = jax.random.PRNGKey(0)
    k1, k2, k3, k4 = jax.random.split(key, 4)

    # ---- 1. small-F path: resident weight slab, 1-D parallel token grid. ----
    in_features = 32
    x = jax.random.normal(k1, (B, S, in_features), jnp.float32)
    params = init_params(k2, in_features, out_features, num_gaussians)

    pi, sigma, mu = jax.jit(mdn_forward)(x, params)
    jax.block_until_ready((pi, sigma, mu))

    pi_r, sigma_r, mu_r = mdn_reference(x, params)
    assert pi.shape == (B, S, num_gaussians)
    assert sigma.shape == (B, S, num_gaussians, out_features)
    assert mu.shape == (B, S, num_gaussians, out_features)
    # Exact-divide softmax: rows must sum to 1 to f32 precision.
    assert jnp.allclose(jnp.sum(pi, axis=-1), 1.0, atol=1e-5)
    _assert_close("pi", pi, pi_r)
    _assert_close("sigma", sigma, sigma_r)
    _assert_close("mu", mu, mu_r)

    # ---- 2. K-tiled path (F reduction with VMEM f32 accumulator). ----------
    in_features2 = 256
    x2 = jax.random.normal(k3, (B, S, in_features2), jnp.float32)
    params2 = init_params(k4, in_features2, out_features, num_gaussians)

    fwd_ktiled = jax.jit(functools.partial(mdn_forward, max_k_tile=128))
    pi2, sigma2, mu2 = fwd_ktiled(x2, params2)
    jax.block_until_ready((pi2, sigma2, mu2))

    pi2_r, sigma2_r, mu2_r = mdn_reference(x2, params2)
    assert jnp.allclose(jnp.sum(pi2, axis=-1), 1.0, atol=1e-5)
    _assert_close("pi (k-tiled)", pi2, pi2_r)
    _assert_close("sigma (k-tiled)", sigma2, sigma2_r)
    _assert_close("mu (k-tiled)", mu2, mu2_r)

    print("KERNEL_OK")
</pallas_src>

<mosaic_0001>
module attributes {stable_mosaic.version = 11 : i64} {
  func.func @mdn_kernel_resident(%arg0: i32, %arg1: memref<8x32xf32, #tpu.memory_space<vmem>>, %arg2: memref<32x384xf32, #tpu.memory_space<vmem>>, %arg3: memref<1x384xf32, #tpu.memory_space<vmem>>, %arg4: memref<8x128xf32, #tpu.memory_space<vmem>>, %arg5: memref<8x128xf32, #tpu.memory_space<vmem>>, %arg6: memref<8x128xf32, #tpu.memory_space<vmem>>) attributes {dimension_semantics = [#tpu.dimension_semantics<parallel>], iteration_bounds = array<i64: 2>, scalar_prefetch = 0 : i64, scratch_operands = 0 : i64, tpu.core_type = #tpu.core_type<tc>, window_params = [{transform_indices = @transform_0, window_bounds = array<i64: 8, 32>}, {pipeline_mode = #tpu.pipeline_mode<synchronous>, transform_indices = @transform_1, window_bounds = array<i64: 32, 384>}, {pipeline_mode = #tpu.pipeline_mode<synchronous>, transform_indices = @transform_2, window_bounds = array<i64: 1, 384>}, {transform_indices = @transform_3, window_bounds = array<i64: 8, 128>}, {transform_indices = @transform_4, window_bounds = array<i64: 8, 128>}, {transform_indices = @transform_5, window_bounds = array<i64: 8, 128>}]} {
    %c0 = arith.constant 0 : index
    %c0_0 = arith.constant 0 : index
    %0 = vector.load %arg1[%c0, %c0_0] : memref<8x32xf32, #tpu.memory_space<vmem>>, vector<8x32xf32>
    %c0_1 = arith.constant 0 : index
    %c0_2 = arith.constant 0 : index
    %1 = vector.load %arg2[%c0_1, %c0_2] : memref<32x384xf32, #tpu.memory_space<vmem>>, vector<32x384xf32>
    %cst = arith.constant dense<0.000000e+00> : vector<8x384xf32>
    %2 = tpu.matmul %0, %1, %cst {dimension_numbers = #tpu.dot_dimension_numbers<[1], [0], [0], [1], [0, 0, 1, 1], [], []>} : vector<8x32xf32>, vector<32x384xf32>, vector<8x384xf32> -> vector<8x384xf32>
    %c0_3 = arith.constant 0 : index
    %c0_4 = arith.constant 0 : index
    %3 = vector.load %arg3[%c0_3, %c0_4] : memref<1x384xf32, #tpu.memory_space<vmem>>, vector<1x384xf32>
    %4 = vector.broadcast %3 : vector<1x384xf32> to vector<8x384xf32>
    %5 = arith.addf %2, %4 : vector<8x384xf32>
    %6 = vector.extract_strided_slice %5 {offsets = [0, 0], sizes = [8, 128], strides = [1, 1]} : vector<8x384xf32> to vector<8x128xf32>
    %cst_5 = arith.constant dense<0xFF800000> : vector<8xf32>
    %7 = vector.multi_reduction <maximumf>, %6, %cst_5 [1] : vector<8x128xf32> to vector<8xf32>
    %8 = vector.shape_cast %7 : vector<8xf32> to vector<8x1xf32>
    %9 = vector.broadcast %8 : vector<8x1xf32> to vector<8x128xf32>
    %10 = arith.subf %6, %9 : vector<8x128xf32>
    %11 = math.exp %10 : vector<8x128xf32>
    %cst_6 = arith.constant dense<0.000000e+00> : vector<8xf32>
    %12 = vector.multi_reduction <add>, %11, %cst_6 [1] : vector<8x128xf32> to vector<8xf32>
    %13 = vector.shape_cast %12 : vector<8xf32> to vector<8x1xf32>
    %14 = vector.broadcast %13 : vector<8x1xf32> to vector<8x128xf32>
    %15 = arith.divf %11, %14 : vector<8x128xf32>
    %c0_7 = arith.constant 0 : index
    %c0_8 = arith.constant 0 : index
    %16 = vector.load %arg4[%c0_7, %c0_8] : memref<8x128xf32, #tpu.memory_space<vmem>>, vector<8x128xf32>
    tpu.vector_store %arg4[%c0_7, %c0_8], %15 {strides = array<i32>} : memref<8x128xf32, #tpu.memory_space<vmem>>, vector<8x128xf32>,
    %17 = vector.extract_strided_slice %5 {offsets = [0, 128], sizes = [8, 128], strides = [1, 1]} : vector<8x384xf32> to vector<8x128xf32>
    %18 = math.exp %17 : vector<8x128xf32>
    %c0_9 = arith.constant 0 : index
    %c0_10 = arith.constant 0 : index
    %19 = vector.load %arg5[%c0_9, %c0_10] : memref<8x128xf32, #tpu.memory_space<vmem>>, vector<8x128xf32>
    tpu.vector_store %arg5[%c0_9, %c0_10], %18 {strides = array<i32>} : memref<8x128xf32, #tpu.memory_space<vmem>>, vector<8x128xf32>,
    %20 = vector.extract_strided_slice %5 {offsets = [0, 256], sizes = [8, 128], strides = [1, 1]} : vector<8x384xf32> to vector<8x128xf32>
    %c0_11 = arith.constant 0 : index
    %c0_12 = arith.constant 0 : index
    %21 = vector.load %arg6[%c0_11, %c0_12] : memref<8x128xf32, #tpu.memory_space<vmem>>, vector<8x128xf32>
    tpu.vector_store %arg6[%c0_11, %c0_12], %20 {strides = array<i32>} : memref<8x128xf32, #tpu.memory_space<vmem>>, vector<8x128xf32>,
    return
  }
  func.func @transform_0(%arg0: i32) -> (i32, i32) {
    %c0_i32 = arith.constant 0 : i32
    %c0_i32_0 = arith.constant 0 : i32
    return %arg0, %c0_i32 : i32, i32
  }
  func.func @transform_1(%arg0: i32) -> (i32, i32) {
    %c0_i32 = arith.constant 0 : i32
    %c0_i32_0 = arith.constant 0 : i32
    %c0_i32_1 = arith.constant 0 : i32
    return %c0_i32, %c0_i32_0 : i32, i32
  }
  func.func @transform_2(%arg0: i32) -> (i32, i32) {
    %c0_i32 = arith.constant 0 : i32
    %c0_i32_0 = arith.constant 0 : i32
    %c0_i32_1 = arith.constant 0 : i32
    return %c0_i32, %c0_i32_0 : i32, i32
  }
  func.func @transform_3(%arg0: i32) -> (i32, i32) {
    %c0_i32 = arith.constant 0 : i32
    %c0_i32_0 = arith.constant 0 : i32
    return %arg0, %c0_i32 : i32, i32
  }
  func.func @transform_4(%arg0: i32) -> (i32, i32) {
    %c0_i32 = arith.constant 0 : i32
    %c0_i32_0 = arith.constant 0 : i32
    return %arg0, %c0_i32 : i32, i32
  }
  func.func @transform_5(%arg0: i32) -> (i32, i32) {
    %c0_i32 = arith.constant 0 : i32
    %c0_i32_0 = arith.constant 0 : i32
    return %arg0, %c0_i32 : i32, i32
  }
}

</mosaic_0001>

<bundles_post_ra>
// kernel: mdn_forward.1
= control target key start
LH: loop header
LB: loop body
LE: loop exit
PB: predicated region body
PF: predicated region fallthrough
CT: control target
= control target key end

     0   :  { %s534_s18 = smov 0   ;;  %s605_s0 = inlined_call_operand.vmem [shape: f32[16,32], index: 0, kind: input, shape index: {}]   ;;  %s606_s1 = inlined_call_operand.vmem [shape: f32[32,384], index: 1, kind: input, shape index: {}]   ;;  %s607_s2 = inlined_call_operand.vmem [shape: f32[1,384], index: 2, kind: input, shape index: {}]   ;;  %s608_s3 = inlined_call_operand.vmem [shape: f32[16,128], index: 3, kind: output, shape index: {0}]   ;;  %s609_s4 = inlined_call_operand.vmem [shape: f32[16,128], index: 4, kind: output, shape index: {1}]   ;;  %s610_s5 = inlined_call_operand.vmem [shape: f32[16,128], index: 5, kind: output, shape index: {2}]  }
   0x1 LB: > { %s468_s19 = sadd.s32 4294967295, %s502_s18   ;;  %p472_p0 = scmp.ge.s32.totalorder %s502_s18, 1  ;;  %s502_s18 = sphi %s534_s18, %s16_s18  }
   0x2   : > { %p191_p1 = scmp.lt.s32.totalorder %s502_s18, 3 }
   0x4   : > { %p192_p2 = pnand %p472_p0, %p191_p1 }
   0x5   : > { %p225_p3 = scmp.lt.s32.totalorder (!%p192_p2), %s468_s19, 1 }
   0x6   : > { %195 = sbr.rel (%p192_p2) target bundleno = 410 (0x19a), region = 32 }
   0xb   : > { %v251_v0 = vld [vmem:[%s606_s1 + $0x48] sm:$0xff]  ;;  %v248_v1 = vld [vmem:[%s606_s1 + $0x30] sm:$0xff]  ;;  %v245_v2 = vld [vmem:[%s606_s1 + $0x18] sm:$0xff]  ;;  %s612_s19 = smov (!%p225_p3, %s468_s19), 1  ;;  %vm262_vm0 = vcmask 261120  }
   0xc   : > { %278 = vmatpush.msra.mxu0 %v251_v0  ;;  %v242_v3 = vld [vmem:[%s606_s1] sm:$0xff]  ;;  %s554_s28 = sshll.u32 %s612_s19, 3  ;;  %v252_v9 = vld [vmem:[%s606_s1 + $0x50] sm:$0xff]  ;;  %v249_v10 = vld [vmem:[%s606_s1 + $0x38] sm:$0xff] }
   0xd   : > { %s228_s6 = scalar_lea.vmem %s605_s0, %s554_s28  ;;  %v254_v5 = vld [vmem:[%s607_s2] sm:$0x7]  ;;  %298 = vmatpush.msra.mxu1 %v252_v9  ;;  %v253_v11 = vld [vmem:[%s606_s1 + $0x58] sm:$0xff]  ;;  %v243_v14 = vld [vmem:[%s606_s1 + $0x8] sm:$0xff]  ;;  %s236_s29 = scalar_lea.vmem %s609_s4, %s554_s28 }
   0xe   : > { %279 = vmatpush.msra.mxu0 %v248_v1  ;;  %v241_v4 = vld [vmem:[%s228_s6] sm:$0xff]  ;;  %v256_v6 = vperm.slane %v254_v5, 0  ;;  %318 = vmatpush.msra.mxu2 %v253_v11  ;;  %v247_v15 = vld [vmem:[%s606_s1 + $0x28] sm:$0xff]  ;;  %v244_v16 = vld [vmem:[%s606_s1 + $0x10] sm:$0xff]  ;;  %v257_v21 = vperm.slane %v254_v5, 1  ;;  %v258_v25 = vperm.slane %v254_v5, 2  ;;  %s240_s7 = scalar_lea.vmem %s610_s5, %s554_s28  ;;  %s232_s10 = scalar_lea.vmem %s608_s3, %s554_s28 }
   0xf   : > { %299 = vmatpush.msra.mxu1 %v249_v10  ;;  %v246_v12 = vld [vmem:[%s606_s1 + $0x20] sm:$0xff] }
  0x10   : > { %280 = vmatpush.msra.mxu0 %v245_v2  ;;  %v250_v13 = vld [vmem:[%s606_s1 + $0x40] sm:$0xff] }
  0x11   : > { %300 = vmatpush.msra.mxu1 %v246_v12  ;;  %319 = vmatpush.msra.mxu2 %v250_v13 }
  0x12   : > { %281 = vmatpush.msra.mxu0 %v242_v3 }
  0x13   : > { %477 = vmatmul.msk.f32.vlgmr.msra.gmra.mxu0 %vm262_vm0, %v241_v4  ;;  %301 = vmatpush.msra.mxu1 %v243_v14 }
  0x14   : > { %478 = vmatmul.msk.f32.vlgmr.msra.gmra.mxu1 %vm262_vm0, %v241_v4  ;;  %320 = vmatpush.msra.mxu2 %v247_v15 }
  0x16   : > { %321 = vmatpush.msra.mxu2 %v244_v16 }
  0x17   : > { %479 = vmatmul.msk.f32.vlgmr.msra.gmra.mxu2 %vm262_vm0, %v241_v4 }
  0x90   : > { %v283_v7 = vpop.f32.mrf.mxu0 }
  0x91   : > { %v284_v8 = vadd.f32 %v283_v7, %v256_v6  ;;  %v303_v22 = vpop.f32.mrf.mxu1 }
  0x92   : > { %v304_v23 = vadd.f32 %v303_v22, %v257_v21 }
  0x93   : > { %326 = vmax.xlane.f32.xlu0 %v284_v8 }
  0x94   : > { %v349_v24 = vmul.f32 1.442695, %v304_v23 }
  0x9a   : > { %v323_v26 = vpop.f32.mrf.mxu2 }
  0x9b   : > { %v324_v27 = vadd.f32 %v323_v26, %v258_v25 }
  0x9d   : > { %352 = vst [vmem:[%s240_s7] sm:$0xff] %v324_v27 }
 0x106   : > { %v327_v17 = vpop.xlane.xlu0 %326 }
 0x107   : > { %v328_v18 = vsub.f32 %v284_v8, %v327_v17 }
 0x109   : > { %v329_v19 = vmul.f32 1.442695, %v328_v18 }
 0x10b   : > { %490 = vpow2.f32 %v329_v19 }
 0x10c   : > { %492 = vpow2.f32 %v349_v24 }
 0x111   : > { %v491_v20 = vpop.eup %490 }
 0x112   : > { %331 = vadd.xlane.f32.xlu0 %v491_v20  ;;  %v493_v28 = vpop.eup %492 }
 0x113   : > { %351 = vst [vmem:[%s236_s29] sm:$0xff] %v493_v28 }
 0x185   : > { %v332_v29 = vpop.xlane.xlu0 %331 }
 0x186   : > { %494 = vrcp.f32 %v332_v29  ;;  %v344_v33 = vand.u32 2147483648, %v332_v29  ;;  %v342_v35 = vand.u32 2147483647, %v332_v29  ;;  %vm338_vm2 = vweird.f32 %v332_v29 }
 0x188   : > { %v345_v37 = vor.u32 1.1754944e-38, %v344_v33  ;;  %vm343_vm4 = vcmp.eq.f32.partialorder %v342_v35, 8.507059e+37 }
 0x18c   : > { %v495_v30 = vpop.eup %494 }
 0x18d   : > { %v334_v31 = vmul.f32 %v495_v30, %v332_v29  ;;  %vm339_vm1 = vweird.f32 %v495_v30 }
 0x18e   : > { %vm340_vm3 = vmor %vm338_vm2, %vm339_vm1 }
 0x18f   : > { %v335_v32 = vsub.f32 1.0, %v334_v31 }
 0x191   : > { %v336_v34 = vmul.f32 %v495_v30, %v335_v32 }
 0x193   : > { %v337_v36 = vadd.f32 %v495_v30, %v336_v34 }
 0x195   : > { %v341_v38 = vsel %vm340_vm3, %v495_v30, %v337_v36 }
 0x196   : > { %v346_v39 = vsel %vm343_vm4, %v345_v37, %v341_v38 }
 0x197   : > { %v347_v40 = vmul.f32 %v491_v20, %v346_v39 }
 0x199   : > { %348 = vst [vmem:[%s232_s10] sm:$0xff] %v347_v40 }
 0x19a PF: > { %s16_s18 = sadd.s32 1, %s502_s18  }
 0x19b   : > { %p13_p4 = scmp.ge.s32.totalorder %s16_s18, 4  }
 0x19d   :  { %15 = sbr.rel (!%p13_p4) target bundleno = 1 (0x1), region = 86 }

</bundles_post_ra>
